<compile_context>
chip_gen: v5e
topology: v5e:2x2
jax: 0.10.0
libtpu: 0.0.40
codegen_flags: <defaults>
</compile_context>

<pallas_src>
import jax
import jax.numpy as jnp
from jax.experimental import pallas as pl
from jax.experimental.pallas import tpu as pltpu


def _htsk_fused_kernel(attn_ref, center_ref, inv_w_ref, x_ref, w1t_ref, b1_ref,
                       w2_ref, b2_ref, fs_ref, cons_ref):
    # ---- antecedent: HTSK firing strength (pure VPU/EUP work) ---------------
    a = attn_ref[...]                                   # (TB, D) f32
    # sigmoid via tanh: exact math, keeps the transcendental on the EUP slot.
    sig = 0.5 * jnp.tanh(0.5 * a) + 0.5
    dist = jnp.abs(sig - center_ref[...])               # L1 distance, broadcast (1, D)
    prot = dist * inv_w_ref[...]                        # inv_w folds (1/width)*sqrt(0.5/D)
    # mean(-0.5*(dist/w)^2) == -sum((dist*(1/w)*sqrt(0.5/D))^2)
    fs_ref[...] = -jnp.sum(prot * prot, axis=-1, keepdims=True)

    # ---- consequent: flatten -> fc1 -> relu -> fc2 -> sigmoid ----------------
    h = jnp.dot(x_ref[...], w1t_ref[...],               # bf16 operands, f32 accumulation
                preferred_element_type=jnp.float32) + b1_ref[...]
    h = jnp.maximum(h, 0.0)                             # ReLU
    # fc2 has out_features == 1: broadcast-mul + lane reduction beats an N=1 matmul.
    o = jnp.sum(h * w2_ref[...], axis=-1, keepdims=True) + b2_ref[0]
    cons_ref[...] = 0.5 * jnp.tanh(0.5 * o) + 0.5       # sigmoid


def htsk_attention_forward(x, attention, center, widths, w1, b1, w2, b2,
                           *, batch_tile=None, matmul_dtype=jnp.bfloat16):
    """x: (B, C, H, W); attention: (B, D) with D = H*H.
    w1: (128, F) / b1: (128,) and w2: (1, 128) / b2: (1,) in PyTorch (out, in) layout.
    Returns (fs: (B,), consequent: (B, 1))."""
    B = x.shape[0]
    D = attention.shape[-1]
    x_flat = x.reshape(B, -1)                           # 'convs' method is identity + view
    F_in = x_flat.shape[-1]
    H_hid = w1.shape[0]

    # ---- layout / constant folding hoisted out of the kernel ----------------
    x_mm = x_flat.astype(matmul_dtype)                  # bf16 halves x HBM traffic
    w1_t = jnp.asarray(w1, jnp.float32).T.astype(matmul_dtype)     # (F_in, H_hid)
    b1_2d = jnp.asarray(b1, jnp.float32).reshape(1, H_hid)
    w2_2d = jnp.asarray(w2, jnp.float32).reshape(1, H_hid)
    b2_1d = jnp.asarray(b2, jnp.float32).reshape(1)     # SMEM scalar
    center_2d = jnp.asarray(center, jnp.float32).reshape(1, D)
    scale = float((0.5 / D) ** 0.5)                     # folds -0.5 * mean(.)
    inv_w_scaled = (scale / jnp.asarray(widths, jnp.float32)).reshape(1, D)

    if batch_tile is None:
        if B <= 256:
            batch_tile = B
        else:
            # multiple of 16 (bf16 sublane tile); >=2 grid steps -> megacore on v7x
            batch_tile = next((t for t in (256, 128, 64, 32, 16) if B % t == 0), B)
    assert B % batch_tile == 0, "batch must be divisible by the batch tile"
    grid = (B // batch_tile,)

    grid_spec = pltpu.PrefetchScalarGridSpec(
        num_scalar_prefetch=0,
        grid=grid,
        in_specs=[
            pl.BlockSpec((batch_tile, D), lambda b: (b, 0)),      # attention (f32)
            pl.BlockSpec((1, D), lambda b: (0, 0)),               # center
            pl.BlockSpec((1, D), lambda b: (0, 0)),               # scaled 1/widths
            pl.BlockSpec((batch_tile, F_in), lambda b: (b, 0)),   # flattened x (matmul dtype)
            pl.BlockSpec((F_in, H_hid), lambda b: (0, 0)),        # W1^T (matmul dtype)
            pl.BlockSpec((1, H_hid), lambda b: (0, 0)),           # b1
            pl.BlockSpec((1, H_hid), lambda b: (0, 0)),           # W2 row (out=1)
            pl.BlockSpec(memory_space=pltpu.MemorySpace.SMEM),    # b2 scalar
        ],
        out_specs=[
            pl.BlockSpec((batch_tile, 1), lambda b: (b, 0)),      # firing strength
            pl.BlockSpec((batch_tile, 1), lambda b: (b, 0)),      # consequent
        ],
    )

    fs, cons = pl.pallas_call(
        _htsk_fused_kernel,
        out_shape=(jax.ShapeDtypeStruct((B, 1), jnp.float32),
                   jax.ShapeDtypeStruct((B, 1), jnp.float32)),
        grid_spec=grid_spec,
        compiler_params=pltpu.CompilerParams(
            dimension_semantics=("parallel",)),                   # shards batch tiles on v7x
    )(attention.astype(jnp.float32), center_2d, inv_w_scaled, x_mm,
      w1_t, b1_2d, w2_2d, b2_1d)

    return fs[:, 0], cons


def htsk_attention_reference(x, attention, center, widths, w1, b1, w2, b2):
    """Pure-JAX reference mirroring the PyTorch forward (all f32)."""
    sig = jax.nn.sigmoid(attention)
    dist = jnp.abs(sig - center)              # L1 distance metric
    prot = dist / widths
    fs = jnp.mean(-0.5 * jnp.square(prot), axis=-1)
    xf = x.reshape(x.shape[0], -1)
    h = jax.nn.relu(xf @ w1.T + b1)
    cons = jax.nn.sigmoid(h @ w2.T + b2)
    return fs, cons


if __name__ == "__main__":
    B = 2
    C, HGT, WID = 2, 16, 16              # input_shape = (1, 2, 16, 16)
    D = HGT * HGT                        # center/widths length = input_shape[-2] ** 2 = 256
    F_IN = C * HGT * WID                 # _to_linear = prod(input_shape[1:]) = 512
    HID = 128

    key = jax.random.PRNGKey(0)
    kx, ka, kc, kw, k1, kb1, k2, kb2 = jax.random.split(key, 8)

    x = jax.random.normal(kx, (B, C, HGT, WID), dtype=jnp.float32)
    attention = jax.random.normal(ka, (B, D), dtype=jnp.float32)

    center = jax.random.uniform(kc, (D,), jnp.float32)
    widths = 0.05 + 0.2 * jax.random.uniform(kw, (D,), jnp.float32)

    bound1 = 1.0 / (F_IN ** 0.5)
    w1 = jax.random.uniform(k1, (HID, F_IN), jnp.float32, -bound1, bound1)  # (out, in)
    b1 = jax.random.uniform(kb1, (HID,), jnp.float32, -bound1, bound1)
    bound2 = 1.0 / (HID ** 0.5)
    w2 = jax.random.uniform(k2, (1, HID), jnp.float32, -bound2, bound2)     # (out, in)
    b2 = jax.random.uniform(kb2, (1,), jnp.float32, -bound2, bound2)

    fs_ref, cons_ref = htsk_attention_reference(x, attention, center, widths, w1, b1, w2, b2)

    # Default (perf) path: bf16 fc1 operands with f32 accumulation.
    fs, cons = htsk_attention_forward(x, attention, center, widths, w1, b1, w2, b2)
    fs = jax.block_until_ready(fs)
    cons = jax.block_until_ready(cons)
    assert fs.shape == (B,)
    assert cons.shape == (B, 1)
    assert jnp.allclose(fs, fs_ref, atol=1e-5, rtol=1e-4), "firing-strength mismatch (bf16 path)"
    # bf16 operand rounding (~2^-8 per element) -> looser tolerance on the consequent only.
    assert jnp.allclose(cons, cons_ref, atol=2e-3, rtol=2e-3), "consequent mismatch (bf16 path)"

    # Full-f32 path for a tight numerical check of the fused kernel itself.
    fs32, cons32 = htsk_attention_forward(x, attention, center, widths, w1, b1, w2, b2,
                                          matmul_dtype=jnp.float32)
    fs32 = jax.block_until_ready(fs32)
    cons32 = jax.block_until_ready(cons32)
    assert jnp.allclose(fs32, fs_ref, atol=1e-5, rtol=1e-4), "firing-strength mismatch (f32 path)"
    assert jnp.allclose(cons32, cons_ref, atol=1e-5, rtol=1e-4), "consequent mismatch (f32 path)"

    print("KERNEL_OK")
</pallas_src>

<mosaic_0001>
module attributes {stable_mosaic.version = 11 : i64} {
  func.func @_htsk_fused_kernel(%arg0: i32, %arg1: memref<2x256xf32, #tpu.memory_space<vmem>>, %arg2: memref<1x256xf32, #tpu.memory_space<vmem>>, %arg3: memref<1x256xf32, #tpu.memory_space<vmem>>, %arg4: memref<2x512xbf16, #tpu.memory_space<vmem>>, %arg5: memref<512x128xbf16, #tpu.memory_space<vmem>>, %arg6: memref<1x128xf32, #tpu.memory_space<vmem>>, %arg7: memref<1x128xf32, #tpu.memory_space<vmem>>, %arg8: memref<1xf32, #tpu.memory_space<smem>>, %arg9: memref<2x1xf32, #tpu.memory_space<vmem>>, %arg10: memref<2x1xf32, #tpu.memory_space<vmem>>) attributes {dimension_semantics = [#tpu.dimension_semantics<parallel>], iteration_bounds = array<i64: 1>, scalar_prefetch = 0 : i64, scratch_operands = 0 : i64, tpu.core_type = #tpu.core_type<tc>, window_params = [{transform_indices = @transform_0, window_bounds = array<i64: 2, 256>}, {pipeline_mode = #tpu.pipeline_mode<synchronous>, transform_indices = @transform_1, window_bounds = array<i64: 1, 256>}, {pipeline_mode = #tpu.pipeline_mode<synchronous>, transform_indices = @transform_2, window_bounds = array<i64: 1, 256>}, {transform_indices = @transform_3, window_bounds = array<i64: 2, 512>}, {pipeline_mode = #tpu.pipeline_mode<synchronous>, transform_indices = @transform_4, window_bounds = array<i64: 512, 128>}, {pipeline_mode = #tpu.pipeline_mode<synchronous>, transform_indices = @transform_5, window_bounds = array<i64: 1, 128>}, {pipeline_mode = #tpu.pipeline_mode<synchronous>, transform_indices = @transform_6, window_bounds = array<i64: 1, 128>}, {transform_indices = @transform_7, window_bounds = array<i64: 1>}, {transform_indices = @transform_8, window_bounds = array<i64: 2, 1>}, {transform_indices = @transform_9, window_bounds = array<i64: 2, 1>}]} {
    %c0 = arith.constant 0 : index
    %c0_0 = arith.constant 0 : index
    %0 = vector.load %arg1[%c0, %c0_0] : memref<2x256xf32, #tpu.memory_space<vmem>>, vector<2x256xf32>
    %cst = arith.constant 5.000000e-01 : f32
    %1 = vector.broadcast %cst : f32 to vector<2x256xf32>
    %2 = arith.mulf %1, %0 : vector<2x256xf32>
    %3 = math.tanh %2 : vector<2x256xf32>
    %cst_1 = arith.constant 5.000000e-01 : f32
    %4 = vector.broadcast %cst_1 : f32 to vector<2x256xf32>
    %5 = arith.mulf %4, %3 : vector<2x256xf32>
    %cst_2 = arith.constant 5.000000e-01 : f32
    %6 = vector.broadcast %cst_2 : f32 to vector<2x256xf32>
    %7 = arith.addf %5, %6 : vector<2x256xf32>
    %c0_3 = arith.constant 0 : index
    %c0_4 = arith.constant 0 : index
    %8 = vector.load %arg2[%c0_3, %c0_4] : memref<1x256xf32, #tpu.memory_space<vmem>>, vector<1x256xf32>
    %9 = vector.broadcast %8 : vector<1x256xf32> to vector<2x256xf32>
    %10 = arith.subf %7, %9 : vector<2x256xf32>
    %11 = math.absf %10 : vector<2x256xf32>
    %c0_5 = arith.constant 0 : index
    %c0_6 = arith.constant 0 : index
    %12 = vector.load %arg3[%c0_5, %c0_6] : memref<1x256xf32, #tpu.memory_space<vmem>>, vector<1x256xf32>
    %13 = vector.broadcast %12 : vector<1x256xf32> to vector<2x256xf32>
    %14 = arith.mulf %11, %13 : vector<2x256xf32>
    %15 = arith.mulf %14, %14 : vector<2x256xf32>
    %cst_7 = arith.constant dense<0.000000e+00> : vector<2xf32>
    %16 = vector.multi_reduction <add>, %15, %cst_7 [1] : vector<2x256xf32> to vector<2xf32>
    %17 = vector.shape_cast %16 : vector<2xf32> to vector<2x1xf32>
    %cst_8 = arith.constant 0.000000e+00 : f32
    %18 = vector.broadcast %cst_8 : f32 to vector<2x1xf32>
    %19 = arith.subf %18, %17 : vector<2x1xf32>
    %c0_9 = arith.constant 0 : index
    %c0_10 = arith.constant 0 : index
    %20 = vector.load %arg9[%c0_9, %c0_10] : memref<2x1xf32, #tpu.memory_space<vmem>>, vector<2x1xf32>
    tpu.vector_store %arg9[%c0_9, %c0_10], %19 {strides = array<i32>} : memref<2x1xf32, #tpu.memory_space<vmem>>, vector<2x1xf32>,
    %c0_11 = arith.constant 0 : index
    %c0_12 = arith.constant 0 : index
    %21 = vector.load %arg4[%c0_11, %c0_12] : memref<2x512xbf16, #tpu.memory_space<vmem>>, vector<2x512xbf16>
    %c0_13 = arith.constant 0 : index
    %c0_14 = arith.constant 0 : index
    %22 = vector.load %arg5[%c0_13, %c0_14] : memref<512x128xbf16, #tpu.memory_space<vmem>>, vector<512x128xbf16>
    %cst_15 = arith.constant dense<0.000000e+00> : vector<2x128xf32>
    %23 = tpu.matmul %21, %22, %cst_15 {dimension_numbers = #tpu.dot_dimension_numbers<[1], [0], [0], [1], [0, 0, 1, 1], [], []>} : vector<2x512xbf16>, vector<512x128xbf16>, vector<2x128xf32> -> vector<2x128xf32>
    %c0_16 = arith.constant 0 : index
    %c0_17 = arith.constant 0 : index
    %24 = vector.load %arg6[%c0_16, %c0_17] : memref<1x128xf32, #tpu.memory_space<vmem>>, vector<1x128xf32>
    %25 = vector.broadcast %24 : vector<1x128xf32> to vector<2x128xf32>
    %26 = arith.addf %23, %25 : vector<2x128xf32>
    %cst_18 = arith.constant 0.000000e+00 : f32
    %27 = vector.broadcast %cst_18 : f32 to vector<2x128xf32>
    %28 = arith.maximumf %26, %27 : vector<2x128xf32>
    %c0_19 = arith.constant 0 : index
    %c0_20 = arith.constant 0 : index
    %29 = vector.load %arg7[%c0_19, %c0_20] : memref<1x128xf32, #tpu.memory_space<vmem>>, vector<1x128xf32>
    %30 = vector.broadcast %29 : vector<1x128xf32> to vector<2x128xf32>
    %31 = arith.mulf %28, %30 : vector<2x128xf32>
    %cst_21 = arith.constant dense<0.000000e+00> : vector<2xf32>
    %32 = vector.multi_reduction <add>, %31, %cst_21 [1] : vector<2x128xf32> to vector<2xf32>
    %33 = vector.shape_cast %32 : vector<2xf32> to vector<2x1xf32>
    %c0_22 = arith.constant 0 : index
    %34 = memref.load %arg8[%c0_22] : memref<1xf32, #tpu.memory_space<smem>>
    %35 = vector.broadcast %34 : f32 to vector<2x1xf32>
    %36 = arith.addf %33, %35 : vector<2x1xf32>
    %cst_23 = arith.constant 5.000000e-01 : f32
    %37 = vector.broadcast %cst_23 : f32 to vector<2x1xf32>
    %38 = arith.mulf %37, %36 : vector<2x1xf32>
    %39 = math.tanh %38 : vector<2x1xf32>
    %cst_24 = arith.constant 5.000000e-01 : f32
    %40 = vector.broadcast %cst_24 : f32 to vector<2x1xf32>
    %41 = arith.mulf %40, %39 : vector<2x1xf32>
    %cst_25 = arith.constant 5.000000e-01 : f32
    %42 = vector.broadcast %cst_25 : f32 to vector<2x1xf32>
    %43 = arith.addf %41, %42 : vector<2x1xf32>
    %c0_26 = arith.constant 0 : index
    %c0_27 = arith.constant 0 : index
    %44 = vector.load %arg10[%c0_26, %c0_27] : memref<2x1xf32, #tpu.memory_space<vmem>>, vector<2x1xf32>
    tpu.vector_store %arg10[%c0_26, %c0_27], %43 {strides = array<i32>} : memref<2x1xf32, #tpu.memory_space<vmem>>, vector<2x1xf32>,
    return
  }
  func.func @transform_0(%arg0: i32) -> (i32, i32) {
    %c0_i32 = arith.constant 0 : i32
    %c0_i32_0 = arith.constant 0 : i32
    return %arg0, %c0_i32 : i32, i32
  }
  func.func @transform_1(%arg0: i32) -> (i32, i32) {
    %c0_i32 = arith.constant 0 : i32
    %c0_i32_0 = arith.constant 0 : i32
    %c0_i32_1 = arith.constant 0 : i32
    return %c0_i32, %c0_i32_0 : i32, i32
  }
  func.func @transform_2(%arg0: i32) -> (i32, i32) {
    %c0_i32 = arith.constant 0 : i32
    %c0_i32_0 = arith.constant 0 : i32
    %c0_i32_1 = arith.constant 0 : i32
    return %c0_i32, %c0_i32_0 : i32, i32
  }
  func.func @transform_3(%arg0: i32) -> (i32, i32) {
    %c0_i32 = arith.constant 0 : i32
    %c0_i32_0 = arith.constant 0 : i32
    return %arg0, %c0_i32 : i32, i32
  }
  func.func @transform_4(%arg0: i32) -> (i32, i32) {
    %c0_i32 = arith.constant 0 : i32
    %c0_i32_0 = arith.constant 0 : i32
    %c0_i32_1 = arith.constant 0 : i32
    return %c0_i32, %c0_i32_0 : i32, i32
  }
  func.func @transform_5(%arg0: i32) -> (i32, i32) {
    %c0_i32 = arith.constant 0 : i32
    %c0_i32_0 = arith.constant 0 : i32
    %c0_i32_1 = arith.constant 0 : i32
    return %c0_i32, %c0_i32_0 : i32, i32
  }
  func.func @transform_6(%arg0: i32) -> (i32, i32) {
    %c0_i32 = arith.constant 0 : i32
    %c0_i32_0 = arith.constant 0 : i32
    %c0_i32_1 = arith.constant 0 : i32
    return %c0_i32, %c0_i32_0 : i32, i32
  }
  func.func @transform_7(%arg0: i32) -> i32 {
    %c0_i32 = arith.constant 0 : i32
    %c0_i32_0 = arith.constant 0 : i32
    return %c0_i32 : i32
  }
  func.func @transform_8(%arg0: i32) -> (i32, i32) {
    %c0_i32 = arith.constant 0 : i32
    %c0_i32_0 = arith.constant 0 : i32
    return %arg0, %c0_i32 : i32, i32
  }
  func.func @transform_9(%arg0: i32) -> (i32, i32) {
    %c0_i32 = arith.constant 0 : i32
    %c0_i32_0 = arith.constant 0 : i32
    return %arg0, %c0_i32 : i32, i32
  }
}

</mosaic_0001>

<bundles_post_ra>
// kernel: tpu_custom_call.1
= control target key start
LH: loop header
LB: loop body
LE: loop exit
PB: predicated region body
PF: predicated region fallthrough
CT: control target
= control target key end

     0   :  { %16 = vsyncpa [#allocation4], 0  ;;  %s843_s0 = inlined_call_operand.hbm [shape: f32[2,256], index: 0, kind: input, shape index: {}]   ;;  %s844_s1 = inlined_call_operand.hbm [shape: f32[1,256], index: 1, kind: input, shape index: {}]   ;;  %s845_s2 = inlined_call_operand.hbm [shape: f32[1,256], index: 2, kind: input, shape index: {}]   ;;  %s846_s3 = inlined_call_operand.vmem [shape: bf16[2,512], index: 3, kind: input, shape index: {}]   ;;  %s847_s4 = inlined_call_operand.hbm [shape: bf16[512,128], index: 4, kind: input, shape index: {}]   ;;  %s848_s5 = inlined_call_operand.vmem [shape: f32[1,128], index: 5, kind: input, shape index: {}]   ;;  %s849_s6 = inlined_call_operand.vmem [shape: f32[1,128], index: 6, kind: input, shape index: {}]   ;;  %s850_s7 = inlined_call_operand.<no memory space> [shape: f32[1], index: 7, kind: input, shape index: {}]   ;;  %s851_s8 = inlined_call_operand.vmem [shape: f32[2,1], index: 8, kind: output, shape index: {0}]   ;;  %s852_s9 = inlined_call_operand.vmem [shape: f32[2,1], index: 9, kind: output, shape index: {1}]  }
   0x1   :  { %17 = vsyncpa [#allocation6], 0  ;;  %s35_s11 = sshll.u32 %s844_s1, 4  ;;  %s36_s11 = int_to_ptr.hbm [resolvable:$true] %s35_s11 }
   0x2   :  { %18 = vsyncpa [#allocation9], 0  ;;  %s752_s12 = smov [#allocation5]   ;;  %s24_s16 = sshll.u32 %s843_s0, 4  ;;  %s25_s16 = int_to_ptr.hbm [resolvable:$true] %s24_s16 }
   0x3   :  { %s37_s13 = sshll.u32 %s752_s12, 4  ;;  %s753_s17 = smov [#allocation3]   ;;  %s38_s13 = int_to_ptr.vmem [resolvable:$true] %s37_s13 }
   0x4   :  { %40 = dma.hbm_to_vmem [thread:$0]  %s36_s11, 32, %s38_s13, [#allocation6]  }
   0x5   :  { %s26_s18 = sshll.u32 %s753_s17, 4  ;;  %s46_s21 = sshll.u32 %s845_s2, 4  ;;  %s27_s18 = int_to_ptr.vmem [resolvable:$true] %s26_s18  ;;  %s47_s21 = int_to_ptr.hbm [resolvable:$true] %s46_s21 }
   0x6   :  { %29 = dma.hbm_to_vmem [thread:$0]  %s25_s16, 64, %s27_s18, [#allocation4]  }
   0x7   :  { %s58_s23 = sshll.u32 %s847_s4, 4  ;;  %s754_s24 = smov [#allocation7]   ;;  %s59_s23 = int_to_ptr.hbm [resolvable:$true] %s58_s23 }
   0x8   :  { %s48_s25 = sshll.u32 %s754_s24, 4  ;;  %s755_s0 = smov [#allocation8]   ;;  %s49_s25 = int_to_ptr.vmem [resolvable:$true] %s48_s25 }
   0x9   :  { %51 = dma.hbm_to_vmem [thread:$0]  %s47_s21, 32, %s49_s25, [#allocation6]  }
   0xa   :  { %s60_s26 = sshll.u32 %s755_s0, 4  ;;  %s756_s27 = smov 64   ;;  %s61_s26 = int_to_ptr.vmem [resolvable:$true] %s60_s26 }
   0xb   :  { %s757_s28 = smov 4  }
   0xc   :  { %66 = dma.hbm_to_vmem [thread:$0]  %s59_s23, 4096, %s61_s26, [#allocation9], %s756_s27, %s756_s27, %s757_s28  }
   0xd   :  { %746 = dma.done.wait [#allocation4], 64  }
   0xe   :  { %747 = vsyncadd [#allocation4], 4294967232 }
   0xf   :  { %748 = dma.done.wait [#allocation6], 64  }
  0x10   :  { %749 = vsyncadd [#allocation6], 4294967232 }
  0x11   :  { %750 = dma.done.wait [#allocation9], 4096  }
  0x12   :  { %751 = vsyncadd [#allocation9], 4294963200  ;;  %v613_v0 = vld [vmem:[#allocation8 + $0x38] sm:$0xff]  ;;  %v612_v4 = vld [vmem:[#allocation8 + $0x30] sm:$0xff]  ;;  %vm99_vm0 = vcmask 1041408   ;;  %vm125_vm1 = vcmask 1024  }
  0x13   :  { %v621_v1 = vld [vmem:[#allocation8 + $0x78] sm:$0xff]  ;;  %398 = vmatpush.bf16.msra.mxu0 %v613_v0  ;;  %v620_v5 = vld [vmem:[#allocation8 + $0x70] sm:$0xff]  ;;  %v611_v8 = vld [vmem:[#allocation8 + $0x28] sm:$0xff] }
  0x14   :  { %v629_v2 = vld [vmem:[#allocation8 + $0xb8] sm:$0xff]  ;;  %411 = vmatpush.bf16.msra.mxu1 %v621_v1  ;;  %v628_v6 = vld [vmem:[#allocation8 + $0xb0] sm:$0xff]  ;;  %v619_v9 = vld [vmem:[#allocation8 + $0x68] sm:$0xff] }
  0x15   :  { %v637_v3 = vld [vmem:[#allocation8 + $0xf8] sm:$0xff]  ;;  %424 = vmatpush.bf16.msra.mxu2 %v629_v2  ;;  %v636_v7 = vld [vmem:[#allocation8 + $0xf0] sm:$0xff]  ;;  %v627_v10 = vld [vmem:[#allocation8 + $0xa8] sm:$0xff] }
  0x16   :  { %437 = vmatpush.bf16.msra.mxu3 %v637_v3  ;;  %v635_v11 = vld [vmem:[#allocation8 + $0xe8] sm:$0xff]  ;;  %v610_v12 = vld [vmem:[#allocation8 + $0x20] sm:$0xff]  ;;  %v89_v14 = vld [vmem:[#allocation3] sm:$0xf] }
  0x17   :  { %399 = vmatpush.bf16.msra.mxu0 %v612_v4  ;;  %v618_v13 = vld [vmem:[#allocation8 + $0x60] sm:$0xff]  ;;  %v90_v17 = vmul.f32 0.5, %v89_v14  ;;  %v94_v18 = vld [vmem:[#allocation5] sm:$0x3]  ;;  %v104_v22 = vld [vmem:[#allocation7] sm:$0x3]  ;;  %v460_v14 = vstv %s850_s7 }
  0x18   :  { %412 = vmatpush.bf16.msra.mxu1 %v620_v5  ;;  %v626_v15 = vld [vmem:[#allocation8 + $0xa0] sm:$0xff]  ;;  %v97_v19 = vperm.slane %v94_v18, 1  ;;  %v609_v20 = vld [vmem:[#allocation8 + $0x18] sm:$0xff]  ;;  %v96_v25 = vperm.slane %v94_v18, 0  ;;  %v107_v27 = vperm.slane %v104_v22, 1  ;;  %v608_v28 = vld [vmem:[#allocation8 + $0x10] sm:$0xff] }
  0x19   :  { %425 = vmatpush.bf16.msra.mxu2 %v628_v6  ;;  %v634_v16 = vld [vmem:[#allocation8 + $0xe0] sm:$0xff]  ;;  %646 = vtanh.f32 %v90_v17  ;;  %v617_v21 = vld [vmem:[#allocation8 + $0x58] sm:$0xff]  ;;  %v616_v29 = vld [vmem:[#allocation8 + $0x50] sm:$0xff]  ;;  %v106_v35 = vperm.slane %v104_v22, 0 }
  0x1a   :  { %438 = vmatpush.bf16.msra.mxu3 %v636_v7  ;;  %v625_v23 = vld [vmem:[#allocation8 + $0x98] sm:$0xff]  ;;  %v98_v26 = vrot.slane %v97_v19, 6  ;;  %v624_v31 = vld [vmem:[#allocation8 + $0x90] sm:$0xff]  ;;  %v108_v36 = vrot.slane %v107_v27, 6  ;;  %v607_v37 = vld [vmem:[#allocation8 + $0x8] sm:$0xff] }
  0x1b   :  { %400 = vmatpush.bf16.msra.mxu0 %v611_v8  ;;  %v633_v24 = vld [vmem:[#allocation8 + $0xd8] sm:$0xff]  ;;  %v632_v32 = vld [vmem:[#allocation8 + $0xd0] sm:$0xff]  ;;  %v615_v38 = vld [vmem:[#allocation8 + $0x48] sm:$0xff] }
  0x1c   :  { %413 = vmatpush.bf16.msra.mxu1 %v619_v9  ;;  %v100_v34 = vsel %vm99_vm0, %v96_v25, %v98_v26  ;;  %v623_v40 = vld [vmem:[#allocation8 + $0x88] sm:$0xff]  ;;  %v109_v43 = vsel %vm99_vm0, %v106_v35, %v108_v36  ;;  %v606_v44 = vld [vmem:[#allocation8] sm:$0xff]  ;;  %v127_v51 = vld [vmem:[%s846_s3] sm:$0xf] }
  0x1d   :  { %426 = vmatpush.bf16.msra.mxu2 %v627_v10  ;;  %v631_v41 = vld [vmem:[#allocation8 + $0xc8] sm:$0xff]  ;;  %v614_v45 = vld [vmem:[#allocation8 + $0x40] sm:$0xff]  ;;  %v644_v58 = vld [vmem:[%s848_s5] ss:$0 sm:$0xff] }
  0x1e   :  { %439 = vmatpush.bf16.msra.mxu3 %v635_v11  ;;  %v622_v47 = vld [vmem:[#allocation8 + $0x80] sm:$0xff]  ;;  %v645_v5 = vld [vmem:[%s849_s6] ss:$0 sm:$0xff] }
  0x1f   :  { %401 = vmatpush.bf16.msra.mxu0 %v610_v12  ;;  %v647_v30 = vpop.eup %646  ;;  %v630_v48 = vld [vmem:[#allocation8 + $0xc0] sm:$0xff] }
  0x20   :  { %414 = vmatpush.bf16.msra.mxu1 %v618_v13  ;;  %v92_v33 = vmul.f32 0.5, %v647_v30 }
  0x21   :  { %427 = vmatpush.bf16.msra.mxu2 %v626_v15 }
  0x22   :  { %440 = vmatpush.bf16.msra.mxu3 %v634_v16  ;;  %v93_v39 = vadd.f32 0.5, %v92_v33 }
  0x23   :  { %402 = vmatpush.bf16.msra.mxu0 %v609_v20 }
  0x24   :  { %415 = vmatpush.bf16.msra.mxu1 %v617_v21  ;;  %v102_v42 = vsub.f32 %v93_v39, %v100_v34 }
  0x25   :  { %428 = vmatpush.bf16.msra.mxu2 %v625_v23 }
  0x26   :  { %441 = vmatpush.bf16.msra.mxu3 %v633_v24  ;;  %v103_v46 = vand.u32 2147483647, %v102_v42 }
  0x27   :  { %403 = vmatpush.bf16.msra.mxu0 %v608_v28 }
  0x28   :  { %416 = vmatpush.bf16.msra.mxu1 %v616_v29  ;;  %v111_v49 = vmul.f32 %v109_v43, %v103_v46 }
  0x29   :  { %429 = vmatpush.bf16.msra.mxu2 %v624_v31 }
  0x2a   :  { %442 = vmatpush.bf16.msra.mxu3 %v632_v32  ;;  %v112_v50 = vmul.f32 %v111_v49, %v111_v49 }
  0x2b   :  { %404 = vmatpush.bf16.msra.mxu0 %v607_v37 }
  0x2c   :  { %417 = vmatpush.bf16.msra.mxu1 %v615_v38  ;;  %114 = vst [vmem:[#allocation1] ss:$4 sm:$0xff] %v112_v50 }
  0x2d   :  { %430 = vmatpush.bf16.msra.mxu2 %v623_v40 }
  0x2e   :  { %443 = vmatpush.bf16.msra.mxu3 %v631_v41 }
  0x2f   :  { %405 = vmatpush.bf16.msra.mxu0 %v606_v44 }
  0x30   :  { %418 = vmatpush.bf16.msra.mxu1 %v614_v45 }
  0x31   :  { %431 = vmatpush.bf16.msra.mxu2 %v622_v47 }
  0x32   :  { %444 = vmatpush.bf16.msra.mxu3 %v630_v48 }
  0x33   :  { %v115_v52 = vld.sshfl [vmem:[#allocation1] sm:$0xff pattern:$0x73625140]  ;;  %v116_v53 = vld.sshfl [vmem:[#allocation1 + $0x8] sm:$0xff pattern:$0x73625140] }
  0x34   :  { %197 = vst [vmem:[#allocation1] ss:$9 sm:$0xff] %v127_v51  ;;  %v119_v11 = vsel %vm99_vm0, %v115_v52, 0.0  ;;  %v120_v12 = vsel %vm99_vm0, %v116_v53, 0.0 }
  0x35   :  { %v121_v13 = vadd.f32 %v120_v12, %v119_v11 }
  0x3b   :  { %v198_v54 = vld [vmem:[#allocation1] sm:$0xff]  ;;  %v199_v55 = vld [vmem:[#allocation1 + $0x9] sm:$0xff]  ;;  %v200_v56 = vld [vmem:[#allocation1 + $0x12] sm:$0xff] }
  0x3c   :  { %406 = vmatmul.bf16.vlgmr.msra.gmra.mxu0 %v198_v54  ;;  %419 = vmatmul.bf16.vlgmr.msra.gmra.mxu1 %v199_v55  ;;  %v201_v57 = vld [vmem:[#allocation1 + $0x1b] sm:$0xff] }
  0x3d   :  { %432 = vmatmul.bf16.vlgmr.msra.gmra.mxu2 %v200_v56  ;;  %445 = vmatmul.bf16.vlgmr.msra.gmra.mxu3 %v201_v57 }
  0xb9   :  { %v407_v59 = vpop.f32.mrf.mxu0  ;;  %v420_v60 = vpop.f32.mrf.mxu1 }
  0xba   :  { %v408_v61 = vadd.f32 %v644_v58, %v407_v59 }
  0xbc   :  { %v421_v62 = vadd.f32 %v420_v60, %v408_v61 }
  0xc0   :  { %v433_v63 = vpop.f32.mrf.mxu2  ;;  %v446_v0 = vpop.f32.mrf.mxu3 }
  0xc1   :  { %v434_v1 = vadd.f32 %v433_v63, %v421_v62  ;;  %v409_v2 = vpop.f32.mrf.mxu0  ;;  %v422_v3 = vpop.f32.mrf.mxu1 }
  0xc3   :  { %v447_v4 = vadd.f32 %v446_v0, %v434_v1 }
  0xc5   :  { %v450_v6 = vmax.f32 %v447_v4, 0.0 }
  0xc7   :  { %v455_v7 = vmul.f32 %v645_v5, %v450_v6 }
  0xc8   :  { %v435_v8 = vpop.f32.mrf.mxu2  ;;  %v448_v9 = vpop.f32.mrf.mxu3 }
  0xc9   :  { %v456_v10 = vsel %vm99_vm0, %v455_v7, 0.0 }
  0xca   :  { %457 = vadd.xlane.f32.xlu0 %v456_v10 }
  0xd2   :  { %122 = vadd.xlane.f32.xlu0 %v121_v13 }
 0x13d   :  { %v458_v15 = vpop.xlane.xlu0 %457 }
 0x13e   :  { %v461_v16 = vadd.f32 %v460_v14, %v458_v15 }
 0x140   :  { %v462_v17 = vmul.f32 0.5, %v461_v16 }
 0x142   :  { %648 = vtanh.f32 %v462_v17 }
 0x145   :  { %v123_v18 = vpop.xlane.xlu0 %122 }
 0x146   :  { %v124_v19 = vsub.f32 0.0, %v123_v18 }
 0x148   :  { %v649_v20 = vpop.eup %648  ;;  %126 = vst.msk [vmem:[%s851_s8] sm:$0x3] %vm125_vm1, %v124_v19 }
 0x149   :  { %v464_v21 = vmul.f32 0.5, %v649_v20 }
 0x14b   :  { %v465_v22 = vadd.f32 0.5, %v464_v21 }
 0x14d   :  { %466 = vst.msk [vmem:[%s852_s9] sm:$0x3] %vm125_vm1, %v465_v22 }
 0x14e   :  { %475 = vsyncpa [#allocation4], 1 }
 0x14f   :  { %476 = vsyncpa [#allocation6], 1 }
 0x150   :  { %477 = vsyncpa [#allocation9], 1 }

</bundles_post_ra>
